<compile_context>
chip_gen: v6e
topology: v6e:2x2x1
jax: 0.10.0
libtpu: 0.0.40
codegen_flags: <defaults>
</compile_context>

<pallas_src>
import jax
import jax.numpy as jnp
from jax.experimental import pallas as pl
from jax.experimental.pallas import tpu as pltpu


_INV_SQRT2 = 0.7071067811865476  # 1/sqrt(2)


def _gelu_exact_f32(h):
    # Exact (erf-based) GELU, matching nn.GELU() default, computed in f32.
    return 0.5 * h * (1.0 + jax.lax.erf(h * _INV_SQRT2))


# ----------------------------- kernels --------------------------------------


def _ffn_kernel_resident(x_ref, w1_ref, b1_ref, w2_ref, b2_ref, o_ref):
    # Full d_ff resident in VMEM: one fused pass, no accumulator needed.
    h = jnp.dot(x_ref[...], w1_ref[...], preferred_element_type=jnp.float32)
    h = _gelu_exact_f32(h + b1_ref[...].astype(jnp.float32))
    out = jnp.dot(h.astype(w2_ref.dtype), w2_ref[...],
                  preferred_element_type=jnp.float32)
    o_ref[...] = (out + b2_ref[...].astype(jnp.float32)).astype(o_ref.dtype)


def _ffn_kernel_stream(x_ref, w1_ref, b1_ref, w2_ref, b2_ref, o_ref, acc_ref):
    # d_ff streamed in tiles (reduction axis last); f32 VMEM accumulator.
    f = pl.program_id(1)

    @pl.when(f == 0)
    def _():
        acc_ref[...] = jnp.zeros_like(acc_ref)

    h = jnp.dot(x_ref[...], w1_ref[...], preferred_element_type=jnp.float32)
    h = _gelu_exact_f32(h + b1_ref[...].astype(jnp.float32))
    acc_ref[...] += jnp.dot(h.astype(w2_ref.dtype), w2_ref[...],
                            preferred_element_type=jnp.float32)

    @pl.when(f == pl.num_programs(1) - 1)
    def _():
        o_ref[...] = (acc_ref[...] +
                      b2_ref[...].astype(jnp.float32)).astype(o_ref.dtype)


# --------------------------- tiling helpers ----------------------------------


def _round_up(x, m):
    return ((x + m - 1) // m) * m


def _cdiv(a, b):
    return -(-a // b)


def _sublane_multiple(dtype):
    return {4: 8, 2: 16, 1: 32}.get(jnp.dtype(dtype).itemsize, 8)


def _vmem_capacity_bytes():
    try:
        info = pltpu.get_tpu_info()
        cap = getattr(info, "vmem_capacity_bytes", None)
        if cap:
            return int(cap)
    except Exception:
        pass
    return 64 << 20  # conservative fallback (v7x physical VMEM)


def _vmem_need(bm, bf, d_model, x_bytes, w_bytes, o_bytes, resident):
    """Estimated VMEM working set for one grid step (double-buffered blocks,
    f32 accumulator, in-kernel intermediates, compiler headroom)."""
    wt = 2 * ((2 * d_model * bf + bf + d_model) * w_bytes)   # W1, W2, b1, b2
    io = 2 * bm * d_model * (x_bytes + o_bytes)              # x / out blocks
    acc = 0 if resident else bm * d_model * 4                # f32 accumulator
    inter = bm * bf * (4 + w_bytes)                          # f32 h + cast copy
    return wt + io + acc + inter + (6 << 20)                 # headroom


def _choose_tiles(M, d_model, d_ff_p, x_bytes, w_bytes, o_bytes, sub, budget):
    """Pick (bm, bf, resident) under the VMEM budget."""
    Ma = _round_up(M, sub)

    # M-tile candidates, largest first, 256-aligned for the 256x256 MXU.
    if Ma <= 256:
        bm_cands = [Ma]
    else:
        cap = _round_up(Ma, 256)
        bm_cands = sorted({min(c, cap) for c in (1024, 768, 512, 256)},
                          reverse=True)
        if Ma >= 512:
            # Keep >= 2 M blocks so the "parallel" axis can split across
            # v7x's two TensorCores.
            half = max(256, _round_up(_cdiv(Ma, 2), 256))
            bm_cands = sorted({min(c, half) for c in bm_cands}, reverse=True)

    # 1) Resident-weights fast path: full d_ff tile, weights fetched once.
    for bm in bm_cands:
        if _vmem_need(bm, d_ff_p, d_model, x_bytes, w_bytes, o_bytes,
                      True) <= budget:
            return bm, d_ff_p, True

    # 2) Streaming path: largest 256-multiple divisor of d_ff_p that fits;
    #    prioritise large bm (arithmetic intensity ~ 2*bm / w_bytes).
    bf_cands = [bf for bf in range(d_ff_p, 255, -256) if d_ff_p % bf == 0]
    for bm in bm_cands:
        for bf in bf_cands:
            if _vmem_need(bm, bf, d_model, x_bytes, w_bytes, o_bytes,
                          False) <= budget:
                return bm, bf, False

    # 3) Last resort: smallest tiles; let the compiler do its best.
    return bm_cands[-1], bf_cands[-1], False


# ------------------------------ wrapper --------------------------------------


@jax.jit
def feedforward_pallas(x, w1, b1, w2, b2):
    """x: (batch, seq, d_model). w1: (d_model, d_ff), w2: (d_ff, d_model)."""
    batch, seq, d_model = x.shape
    d_ff = w1.shape[1]
    M = batch * seq

    x_bytes = jnp.dtype(x.dtype).itemsize
    w_bytes = jnp.dtype(w1.dtype).itemsize
    o_bytes = x_bytes
    sub = _sublane_multiple(x.dtype)

    # Pad d_ff to a 256 multiple (zero padding is exact for this FFN).
    d_ff_p = _round_up(d_ff, 256)

    vmem_cap = _vmem_capacity_bytes()
    budget = int(vmem_cap * 0.85)

    bm, bf, resident = _choose_tiles(M, d_model, d_ff_p, x_bytes, w_bytes,
                                     o_bytes, sub, budget)
    Mp = _round_up(M, bm)
    n_m = Mp // bm
    n_f = d_ff_p // bf

    # Prepare (zero-padded) operands.
    x2d = x.reshape(M, d_model)
    if Mp != M:
        x2d = jnp.pad(x2d, ((0, Mp - M), (0, 0)))
    w1_p = w1
    b1_p = b1.reshape(1, d_ff)
    w2_p = w2
    if d_ff_p != d_ff:
        w1_p = jnp.pad(w1, ((0, 0), (0, d_ff_p - d_ff)))
        b1_p = jnp.pad(b1_p, ((0, 0), (0, d_ff_p - d_ff)))
        w2_p = jnp.pad(w2, ((0, d_ff_p - d_ff), (0, 0)))
    b2_2d = b2.reshape(1, d_model)

    vmem_limit = int(min(
        max(_vmem_need(bm, bf, d_model, x_bytes, w_bytes, o_bytes, resident),
            32 << 20),
        int(vmem_cap * 0.9)))

    weight_passes = 1 if n_f == 1 else n_m
    cost = pl.CostEstimate(
        flops=4 * Mp * d_model * d_ff_p,
        transcendentals=Mp * d_ff_p,
        bytes_accessed=(Mp * d_model * (x_bytes + o_bytes)
                        + weight_passes * 2 * d_model * d_ff_p * w_bytes
                        + (d_ff_p + d_model) * w_bytes),
    )

    if n_f == 1:
        # Resident-weights path: weights never change block -> fetched once.
        out2d = pl.pallas_call(
            _ffn_kernel_resident,
            out_shape=jax.ShapeDtypeStruct((Mp, d_model), x.dtype),
            grid_spec=pltpu.PrefetchScalarGridSpec(
                num_scalar_prefetch=0,
                grid=(n_m,),
                in_specs=[
                    pl.BlockSpec((bm, d_model), lambda i: (i, 0)),        # x
                    pl.BlockSpec((d_model, d_ff_p), lambda i: (0, 0)),    # W1
                    pl.BlockSpec((1, d_ff_p), lambda i: (0, 0)),          # b1
                    pl.BlockSpec((d_ff_p, d_model), lambda i: (0, 0)),    # W2
                    pl.BlockSpec((1, d_model), lambda i: (0, 0)),         # b2
                ],
                out_specs=pl.BlockSpec((bm, d_model), lambda i: (i, 0)),
            ),
            compiler_params=pltpu.CompilerParams(
                dimension_semantics=("parallel",),
                vmem_limit_bytes=vmem_limit,
            ),
            cost_estimate=cost,
        )(x2d, w1_p, b1_p, w2_p, b2_2d)
    else:
        # Streaming path: d_ff tiles last (reduction), f32 accumulator scratch.
        out2d = pl.pallas_call(
            _ffn_kernel_stream,
            out_shape=jax.ShapeDtypeStruct((Mp, d_model), x.dtype),
            grid_spec=pltpu.PrefetchScalarGridSpec(
                num_scalar_prefetch=0,
                grid=(n_m, n_f),
                in_specs=[
                    pl.BlockSpec((bm, d_model), lambda i, f: (i, 0)),     # x
                    pl.BlockSpec((d_model, bf), lambda i, f: (0, f)),     # W1
                    pl.BlockSpec((1, bf), lambda i, f: (0, f)),           # b1
                    pl.BlockSpec((bf, d_model), lambda i, f: (f, 0)),     # W2
                    pl.BlockSpec((1, d_model), lambda i, f: (0, 0)),      # b2
                ],
                out_specs=pl.BlockSpec((bm, d_model), lambda i, f: (i, 0)),
                scratch_shapes=[pltpu.VMEM((bm, d_model), jnp.float32)],
            ),
            compiler_params=pltpu.CompilerParams(
                dimension_semantics=("parallel", "arbitrary"),
                vmem_limit_bytes=vmem_limit,
            ),
            cost_estimate=cost,
        )(x2d, w1_p, b1_p, w2_p, b2_2d)

    return out2d[:M].reshape(batch, seq, d_model)


# ------------------------------ reference ------------------------------------


def feedforward_ref(x, w1, b1, w2, b2):
    h = jnp.dot(x, w1) + b1
    h = jax.nn.gelu(h, approximate=False)
    return jnp.dot(h, w2) + b2


def _make_params(key, d_model, d_ff, dtype=jnp.float32):
    kw1, kb1, kw2, kb2 = jax.random.split(key, 4)
    bound1 = 1.0 / jnp.sqrt(d_model)
    w1 = jax.random.uniform(kw1, (d_model, d_ff), dtype, -bound1, bound1)
    b1 = jax.random.uniform(kb1, (d_ff,), dtype, -bound1, bound1)
    bound2 = 1.0 / jnp.sqrt(d_ff)
    w2 = jax.random.uniform(kw2, (d_ff, d_model), dtype, -bound2, bound2)
    b2 = jax.random.uniform(kb2, (d_model,), dtype, -bound2, bound2)
    return w1, b1, w2, b2


if __name__ == "__main__":
    key = jax.random.PRNGKey(0)

    # Test 1: small shapes consistent with the module (batch, seq, d_model).
    batch, seq, d_model, d_ff = 2, 8, 32, 64
    k1, k2, k3, k4 = jax.random.split(key, 4)
    x = jax.random.normal(k1, (batch, seq, d_model), dtype=jnp.float32)
    w1, b1, w2, b2 = _make_params(k2, d_model, d_ff)

    out = jax.block_until_ready(feedforward_pallas(x, w1, b1, w2, b2))
    ref = feedforward_ref(x, w1, b1, w2, b2)
    assert out.shape == (batch, seq, d_model)
    assert jnp.allclose(out, ref, atol=1e-5, rtol=1e-5), "mismatch vs reference (small)"

    # Test 2: exercises M padding (M=300) and d_ff padding (384 -> 512).
    batch2, seq2, d_model2, d_ff2 = 3, 100, 128, 384
    x2 = jax.random.normal(k3, (batch2, seq2, d_model2), dtype=jnp.float32)
    w1b, b1b, w2b, b2b = _make_params(k4, d_model2, d_ff2)

    out2 = jax.block_until_ready(feedforward_pallas(x2, w1b, b1b, w2b, b2b))
    ref2 = feedforward_ref(x2, w1b, b1b, w2b, b2b)
    assert out2.shape == (batch2, seq2, d_model2)
    assert jnp.allclose(out2, ref2, atol=1e-4, rtol=1e-4), "mismatch vs reference (padded)"

    print("KERNEL_OK")
</pallas_src>

<mosaic_0001>
module attributes {stable_mosaic.version = 11 : i64} {
  func.func @_ffn_kernel_resident(%arg0: i32, %arg1: memref<16x32xf32, #tpu.memory_space<vmem>>, %arg2: memref<32x256xf32, #tpu.memory_space<vmem>>, %arg3: memref<1x256xf32, #tpu.memory_space<vmem>>, %arg4: memref<256x32xf32, #tpu.memory_space<vmem>>, %arg5: memref<1x32xf32, #tpu.memory_space<vmem>>, %arg6: memref<16x32xf32, #tpu.memory_space<vmem>>) attributes {dimension_semantics = [#tpu.dimension_semantics<parallel>], iteration_bounds = array<i64: 1>, scalar_prefetch = 0 : i64, scratch_operands = 0 : i64, tpu.core_type = #tpu.core_type<tc>, window_params = [{transform_indices = @transform_0, window_bounds = array<i64: 16, 32>}, {pipeline_mode = #tpu.pipeline_mode<synchronous>, transform_indices = @transform_1, window_bounds = array<i64: 32, 256>}, {pipeline_mode = #tpu.pipeline_mode<synchronous>, transform_indices = @transform_2, window_bounds = array<i64: 1, 256>}, {pipeline_mode = #tpu.pipeline_mode<synchronous>, transform_indices = @transform_3, window_bounds = array<i64: 256, 32>}, {pipeline_mode = #tpu.pipeline_mode<synchronous>, transform_indices = @transform_4, window_bounds = array<i64: 1, 32>}, {transform_indices = @transform_5, window_bounds = array<i64: 16, 32>}]} {
    %c0 = arith.constant 0 : index
    %c0_0 = arith.constant 0 : index
    %0 = vector.load %arg1[%c0, %c0_0] : memref<16x32xf32, #tpu.memory_space<vmem>>, vector<16x32xf32>
    %c0_1 = arith.constant 0 : index
    %c0_2 = arith.constant 0 : index
    %1 = vector.load %arg2[%c0_1, %c0_2] : memref<32x256xf32, #tpu.memory_space<vmem>>, vector<32x256xf32>
    %cst = arith.constant dense<0.000000e+00> : vector<16x256xf32>
    %2 = tpu.matmul %0, %1, %cst {dimension_numbers = #tpu.dot_dimension_numbers<[1], [0], [0], [1], [0, 0, 1, 1], [], []>} : vector<16x32xf32>, vector<32x256xf32>, vector<16x256xf32> -> vector<16x256xf32>
    %c0_3 = arith.constant 0 : index
    %c0_4 = arith.constant 0 : index
    %3 = vector.load %arg3[%c0_3, %c0_4] : memref<1x256xf32, #tpu.memory_space<vmem>>, vector<1x256xf32>
    %4 = vector.broadcast %3 : vector<1x256xf32> to vector<16x256xf32>
    %5 = arith.addf %2, %4 : vector<16x256xf32>
    %cst_5 = arith.constant 5.000000e-01 : f32
    %6 = vector.broadcast %cst_5 : f32 to vector<16x256xf32>
    %7 = arith.mulf %6, %5 : vector<16x256xf32>
    %cst_6 = arith.constant 0.707106769 : f32
    %8 = vector.broadcast %cst_6 : f32 to vector<16x256xf32>
    %9 = arith.mulf %5, %8 : vector<16x256xf32>
    %10 = math.erf %9 : vector<16x256xf32>
    %cst_7 = arith.constant 1.000000e+00 : f32
    %11 = vector.broadcast %cst_7 : f32 to vector<16x256xf32>
    %12 = arith.addf %11, %10 : vector<16x256xf32>
    %13 = arith.mulf %7, %12 : vector<16x256xf32>
    %c0_8 = arith.constant 0 : index
    %c0_9 = arith.constant 0 : index
    %14 = vector.load %arg4[%c0_8, %c0_9] : memref<256x32xf32, #tpu.memory_space<vmem>>, vector<256x32xf32>
    %cst_10 = arith.constant dense<0.000000e+00> : vector<16x32xf32>
    %15 = tpu.matmul %13, %14, %cst_10 {dimension_numbers = #tpu.dot_dimension_numbers<[1], [0], [0], [1], [0, 0, 1, 1], [], []>} : vector<16x256xf32>, vector<256x32xf32>, vector<16x32xf32> -> vector<16x32xf32>
    %c0_11 = arith.constant 0 : index
    %c0_12 = arith.constant 0 : index
    %16 = vector.load %arg5[%c0_11, %c0_12] : memref<1x32xf32, #tpu.memory_space<vmem>>, vector<1x32xf32>
    %17 = vector.broadcast %16 : vector<1x32xf32> to vector<16x32xf32>
    %18 = arith.addf %15, %17 : vector<16x32xf32>
    %c0_13 = arith.constant 0 : index
    %c0_14 = arith.constant 0 : index
    %19 = vector.load %arg6[%c0_13, %c0_14] : memref<16x32xf32, #tpu.memory_space<vmem>>, vector<16x32xf32>
    tpu.vector_store %arg6[%c0_13, %c0_14], %18 {strides = array<i32>} : memref<16x32xf32, #tpu.memory_space<vmem>>, vector<16x32xf32>,
    return
  }
  func.func @transform_0(%arg0: i32) -> (i32, i32) {
    %c0_i32 = arith.constant 0 : i32
    %c0_i32_0 = arith.constant 0 : i32
    return %arg0, %c0_i32 : i32, i32
  }
  func.func @transform_1(%arg0: i32) -> (i32, i32) {
    %c0_i32 = arith.constant 0 : i32
    %c0_i32_0 = arith.constant 0 : i32
    %c0_i32_1 = arith.constant 0 : i32
    return %c0_i32, %c0_i32_0 : i32, i32
  }
  func.func @transform_2(%arg0: i32) -> (i32, i32) {
    %c0_i32 = arith.constant 0 : i32
    %c0_i32_0 = arith.constant 0 : i32
    %c0_i32_1 = arith.constant 0 : i32
    return %c0_i32, %c0_i32_0 : i32, i32
  }
  func.func @transform_3(%arg0: i32) -> (i32, i32) {
    %c0_i32 = arith.constant 0 : i32
    %c0_i32_0 = arith.constant 0 : i32
    %c0_i32_1 = arith.constant 0 : i32
    return %c0_i32, %c0_i32_0 : i32, i32
  }
  func.func @transform_4(%arg0: i32) -> (i32, i32) {
    %c0_i32 = arith.constant 0 : i32
    %c0_i32_0 = arith.constant 0 : i32
    %c0_i32_1 = arith.constant 0 : i32
    return %c0_i32, %c0_i32_0 : i32, i32
  }
  func.func @transform_5(%arg0: i32) -> (i32, i32) {
    %c0_i32 = arith.constant 0 : i32
    %c0_i32_0 = arith.constant 0 : i32
    return %arg0, %c0_i32 : i32, i32
  }
}

</mosaic_0001>

<bundles_post_ra>
// kernel: feedforward_pallas.1
= control target key start
LH: loop header
LB: loop body
LE: loop exit
PB: predicated region body
PF: predicated region fallthrough
CT: control target
= control target key end

     0   :  { %v354_v4 = vmov 0.0   ;;  %s527_s0 = inlined_call_operand.vmem [shape: f32[16,32], index: 0, kind: input, shape index: {}]   ;;  %s528_s1 = inlined_call_operand.vmem [shape: f32[32,256], index: 1, kind: input, shape index: {}]   ;;  %s529_s2 = inlined_call_operand.vmem [shape: f32[1,256], index: 2, kind: input, shape index: {}]   ;;  %s530_s3 = inlined_call_operand.vmem [shape: f32[256,32], index: 3, kind: input, shape index: {}]   ;;  %s531_s4 = inlined_call_operand.vmem [shape: f32[1,32], index: 4, kind: input, shape index: {}]   ;;  %s532_s5 = inlined_call_operand.hbm [shape: f32[16,32], index: 5, kind: output, shape index: {}]  }
   0x1   :  { %v30_v0 = vld [vmem:[%s528_s1 + $0x38] sm:$0xff]  ;;  %v29_v1 = vld [vmem:[%s528_s1 + $0x30] sm:$0xff]  ;;  %v28_v2 = vld [vmem:[%s528_s1 + $0x28] sm:$0xff]  ;;  %114 = vmatprep.mubr.f32.mxu0 %v354_v4 }
   0x2   :  { %74 = vmatprep.subr.mxu0 %v30_v0  ;;  %v27_v3 = vld [vmem:[%s528_s1 + $0x20] sm:$0xff]  ;;  %v26_v5 = vld [vmem:[%s528_s1 + $0x18] sm:$0xff]  ;;  %v25_v6 = vld [vmem:[%s528_s1 + $0x10] sm:$0xff] }
   0x3   :  { %75 = vmatpush1.msra.mxu0 %v29_v1  ;;  %v178_v7 = vld [vmem:[%s530_s3 + $0xf8] sm:$0xff]  ;;  %v24_v9 = vld [vmem:[%s528_s1 + $0x8] sm:$0xff]  ;;  %v177_v10 = vld [vmem:[%s530_s3 + $0xf0] sm:$0xff] }
   0x4   :  { %76 = vmatprep.subr.mxu0 %v28_v2  ;;  %v162_v8 = vld [vmem:[%s530_s3 + $0x78] sm:$0xff]  ;;  %282 = vmatprep.subr.mxu1 %v178_v7  ;;  %v161_v11 = vld [vmem:[%s530_s3 + $0x70] sm:$0xff]  ;;  %v23_v12 = vld [vmem:[%s528_s1] sm:$0xff] }
   0x5   :  { %77 = vmatpush1.msra.mxu0 %v27_v3  ;;  %283 = vmatpush3.msra.mxu1 %v162_v8  ;;  %v176_v13 = vld [vmem:[%s530_s3 + $0xe8] sm:$0xff] }
   0x6   :  { %78 = vmatprep.subr.mxu0 %v26_v5 }
   0x7   :  { %10 = vsyncpa [#allocation3], 0  ;;  %79 = vmatpush1.msra.mxu0 %v25_v6  ;;  %v21_v14 = vld [vmem:[%s527_s0] sm:$0xff]  ;;  %vm43_vm0 = vcmask 261120   ;;  %284 = vmatprep.subr.mxu1 %v177_v10  ;;  %v160_v15 = vld [vmem:[%s530_s3 + $0x68] sm:$0xff]  ;;  %v33_v43 = vlaneseq  ;;  %s355_s24 = smov [#allocation2]  }
   0x8   :  { %80 = vmatprep.subr.mxu0 %v24_v9  ;;  %285 = vmatpush3.msra.mxu1 %v161_v11  ;;  %v22_v16 = vld [vmem:[%s527_s0 + $0x8] sm:$0xff]  ;;  %v175_v17 = vld [vmem:[%s530_s3 + $0xe0] sm:$0xff]  ;;  %v174_v19 = vld [vmem:[%s530_s3 + $0xd8] sm:$0xff]  ;;  %s268_s25 = sshll.u32 %s355_s24, 4  ;;  %s269_s25 = int_to_ptr.vmem [resolvable:$true] %s268_s25 }
   0x9   :  { %81 = vmatpush1.msra.mxu0 %v23_v12  ;;  %286 = vmatprep.subr.mxu1 %v176_v13  ;;  %v159_v18 = vld [vmem:[%s530_s3 + $0x60] sm:$0xff]  ;;  %v158_v20 = vld [vmem:[%s530_s3 + $0x58] sm:$0xff]  ;;  %v173_v21 = vld [vmem:[%s530_s3 + $0xd0] sm:$0xff]  ;;  %v34_v44 = vshrl.u32 %v33_v43, 7  ;;  %s332_s26 = scalar_lea.vmem %s269_s25, 256  ;;  %p337_p1 = scmp.lt.s32.totalorder %s269_s25, %s269_s25 }
   0xa   :  { %279 = vmatmul.mubr.msk.f32.vlgmr.msra.gmra.mxu0 %vm43_vm0, %v21_v14  ;;  %287 = vmatpush3.msra.mxu1 %v160_v15  ;;  %v157_v22 = vld [vmem:[%s530_s3 + $0x50] sm:$0xff]  ;;  %v172_v23 = vld [vmem:[%s530_s3 + $0xc8] sm:$0xff]  ;;  %v171_v25 = vld [vmem:[%s530_s3 + $0xc0] sm:$0xff]  ;;  %p333_p0 = scmp.ne.s32.totalorder %s269_s25, %s332_s26  ;;  %p338_p2 = scmp.lt.s32.totalorder %s332_s26, %s332_s26 }
   0xb   :  { %120 = vmatprep.mubr.f32.mxu0 %v354_v4  ;;  %288 = vmatprep.subr.mxu1 %v175_v17  ;;  %v156_v24 = vld [vmem:[%s530_s3 + $0x48] sm:$0xff]  ;;  %v155_v26 = vld [vmem:[%s530_s3 + $0x40] sm:$0xff]  ;;  %v170_v27 = vld [vmem:[%s530_s3 + $0xb8] sm:$0xff]  ;;  %v35_v45 = vsub.s32 0, %v34_v44  ;;  %v39_v47 = vsub.s32 1, %v34_v44 }
   0xc   :  { %289 = vmatpush3.msra.mxu1 %v159_v18  ;;  %v154_v28 = vld [vmem:[%s530_s3 + $0x38] sm:$0xff]  ;;  %v169_v29 = vld [vmem:[%s530_s3 + $0xb0] sm:$0xff]  ;;  %v168_v31 = vld [vmem:[%s530_s3 + $0xa8] sm:$0xff]  ;;  %p339_p3 = por %p338_p2, %p337_p1 }
   0xd   :  { %290 = vmatprep.subr.mxu1 %v174_v19  ;;  %v153_v30 = vld [vmem:[%s530_s3 + $0x30] sm:$0xff]  ;;  %v152_v32 = vld [vmem:[%s530_s3 + $0x28] sm:$0xff]  ;;  %v167_v33 = vld [vmem:[%s530_s3 + $0xa0] sm:$0xff] }
   0xe   :  { %280 = vmatmul.mubr.msk.f32.gmra.mxu0 %vm43_vm0, %v22_v16  ;;  %291 = vmatpush3.msra.mxu1 %v158_v20  ;;  %v151_v34 = vld [vmem:[%s530_s3 + $0x20] sm:$0xff]  ;;  %v166_v35 = vld [vmem:[%s530_s3 + $0x98] sm:$0xff]  ;;  %v165_v37 = vld [vmem:[%s530_s3 + $0x90] sm:$0xff]  ;;  %p340_p4 = pnand %p339_p3, %p333_p0 }
   0xf   :  { %292 = vmatprep.subr.mxu1 %v173_v21  ;;  %v150_v36 = vld [vmem:[%s530_s3 + $0x18] sm:$0xff]  ;;  %v149_v38 = vld [vmem:[%s530_s3 + $0x10] sm:$0xff]  ;;  %v164_v39 = vld [vmem:[%s530_s3 + $0x88] sm:$0xff] }
  0x10   :  { %293 = vmatpush3.msra.mxu1 %v157_v22  ;;  %v148_v40 = vld [vmem:[%s530_s3 + $0x8] sm:$0xff]  ;;  %v163_v41 = vld [vmem:[%s530_s3 + $0x80] sm:$0xff] }
  0x11   :  { %294 = vmatprep.subr.mxu1 %v172_v23  ;;  %v147_v42 = vld [vmem:[%s530_s3] sm:$0xff] }
  0x12   :  { %295 = vmatpush3.msra.mxu1 %v156_v24  ;;  %v31_v46 = vld [vmem:[%s529_s2] sm:$0x3] }
  0x13   :  { %296 = vmatprep.subr.mxu1 %v171_v25  ;;  %v36_v48 = vrot.slane %v31_v46, %v35_v45  ;;  %v40_v49 = vrot.slane %v31_v46, %v39_v47  ;;  %v281_v15 = vld [vmem:[%s531_s4] ss:$0 sm:$0xff] }
  0x14   :  { %297 = vmatpush3.msra.mxu1 %v155_v26 }
  0x15   :  { %298 = vmatprep.subr.mxu1 %v170_v27 }
  0x16   :  { %299 = vmatpush3.msra.mxu1 %v154_v28 }
  0x17   :  { %300 = vmatprep.subr.mxu1 %v169_v29 }
  0x18   :  { %301 = vmatpush3.msra.mxu1 %v153_v30 }
  0x19   :  { %302 = vmatprep.subr.mxu1 %v168_v31 }
  0x1a   :  { %303 = vmatpush3.msra.mxu1 %v152_v32 }
  0x1b   :  { %304 = vmatprep.subr.mxu1 %v167_v33 }
  0x1c   :  { %305 = vmatpush3.msra.mxu1 %v151_v34 }
  0x1d   :  { %306 = vmatprep.subr.mxu1 %v166_v35 }
  0x1e   :  { %307 = vmatpush3.msra.mxu1 %v150_v36 }
  0x1f   :  { %308 = vmatprep.subr.mxu1 %v165_v37 }
  0x20   :  { %309 = vmatpush3.msra.mxu1 %v149_v38 }
  0x21   :  { %310 = vmatprep.subr.mxu1 %v164_v39 }
  0x22   :  { %311 = vmatpush3.msra.mxu1 %v148_v40 }
  0x23   :  { %312 = vmatprep.subr.mxu1 %v163_v41 }
  0x24   :  { %313 = vmatpush3.msra.mxu1 %v147_v42 }
  0xca   :  { %v116_v50 = vpop.f32.mrf.mxu0 }
  0xcb   :  { %v117_v51 = vadd.f32 %v116_v50, %v36_v48 }
  0xcc   :  { %v118_v52 = vpop.f32.mrf.mxu0 }
  0xcd   :  { %v131_v53 = vmul.f32 0.70710677, %v117_v51  ;;  %v119_v54 = vadd.f32 %v118_v52, %v40_v49  ;;  %v127_v4 = vmul.f32 0.5, %v117_v51 }
  0xce   :  { %v122_v55 = vpop.f32.mrf.mxu0 }
  0xcf   :  { %324 = verf.f32 %v131_v53  ;;  %v132_v56 = vmul.f32 0.70710677, %v119_v54  ;;  %v123_v57 = vadd.f32 %v122_v55, %v36_v48  ;;  %v128_v1 = vmul.f32 0.5, %v119_v54 }
  0xd0   :  { %v124_v58 = vpop.f32.mrf.mxu0 }
  0xd1   :  { %326 = verf.f32 %v132_v56  ;;  %v133_v59 = vmul.f32 0.70710677, %v123_v57  ;;  %v125_v60 = vadd.f32 %v124_v58, %v40_v49  ;;  %v129_v11 = vmul.f32 0.5, %v123_v57 }
  0xd3   :  { %328 = verf.f32 %v133_v59  ;;  %v134_v61 = vmul.f32 0.70710677, %v125_v60  ;;  %v130_v9 = vmul.f32 0.5, %v125_v60 }
  0xd5   :  { %330 = verf.f32 %v134_v61 }
  0xdc   :  { %v325_v62 = vpop.eup %324 }
  0xdd   :  { %v139_v0 = vadd.f32 1.0, %v325_v62 }
  0xde   :  { %v327_v63 = vpop.eup %326 }
  0xdf   :  { %v140_v2 = vadd.f32 1.0, %v327_v63  ;;  %v143_v7 = vmul.f32 %v139_v0, %v127_v4 }
  0xe0   :  { %v329_v3 = vpop.eup %328 }
  0xe1   :  { %v144_v5 = vmul.f32 %v140_v2, %v128_v1  ;;  %v141_v8 = vadd.f32 1.0, %v329_v3 }
  0xe2   :  { %v331_v6 = vpop.eup %330 }
  0xe3   :  { %250 = vmatprep.mubr.f32.mxu1 %v144_v5  ;;  %v142_v10 = vadd.f32 1.0, %v331_v6  ;;  %v145_v13 = vmul.f32 %v141_v8, %v129_v11 }
  0xe4   :  { %251 = vmatmul.mubr.f32.vlgmr.msra.gmra.mxu1 %v143_v7 }
  0xe5   :  { %v146_v12 = vmul.f32 %v142_v10, %v130_v9 }
  0xe7   :  { %255 = vmatprep.mubr.f32.mxu1 %v146_v12 }
  0xe8   :  { %256 = vmatmul.mubr.f32.gmra.mxu1 %v145_v13 }
 0x1a4   :  { %v314_v14 = vpop.f32.mrf.mxu1 }
 0x1a6   :  { %v315_v16 = vpop.f32.mrf.mxu1 }
 0x1a7   :  { %v316_v17 = vadd.f32 %v315_v16, %v314_v14 }
 0x1a8   :  { %v317_v18 = vpop.f32.mrf.mxu1 }
 0x1a9   :  { %v253_v19 = vadd.f32 %v316_v17, %v281_v15 }
 0x1aa   :  { %v318_v20 = vpop.f32.mrf.mxu1 }
 0x1ab   :  { %261 = vst.msk [vmem:[#allocation2] sm:$0xff] %vm43_vm0, %v253_v19  ;;  %v319_v21 = vadd.f32 %v318_v20, %v317_v18 }
 0x1ad   :  { %v258_v22 = vadd.f32 %v319_v21, %v281_v15 }
 0x1af   :  { %262 = vst.msk [vmem:[#allocation2 + $0x8] sm:$0xff] %vm43_vm0, %v258_v22 }
 0x1b0   :  { %343 = shalt.err (!%p340_p4)
}
 0x1b1   :  { %s356_s4 = smov 128   ;;  %s357_s27 = smov 8  }
 0x1b2   :  { %274 = dma.vmem_to_hbm [thread:$0]  %s269_s25, 256, %s532_s5, [#allocation3], %s356_s4, %s356_s4, %s357_s27  }
 0x1b3   :  { %352 = dma.done.wait [#allocation3], 256  }
 0x1b4   :  { %353 = vsyncadd [#allocation3], 4294967040 }
 0x1b5   :  { %278 = vsyncpa [#allocation3], 1 }

</bundles_post_ra>
